<compile_context>
chip_gen: v7x
topology: tpu7x:2x2x1
jax: 0.10.0
libtpu: 0.0.40
codegen_flags: <defaults>
</compile_context>

<pallas_src>
import functools

import jax
import jax.numpy as jnp
from jax import lax
from jax.experimental import pallas as pl
from jax.experimental.pallas import tpu as pltpu


def _gaussian_smearing_kernel(coeff, start, step, n_gaussians, d_ref, o_ref):
    """d_ref: (TM, 1) distances tile; o_ref: (TM, G) Gaussian basis tile."""
    d = d_ref[...]                                                    # (TM, 1) f32
    # Offsets built in-kernel: start + step * [0, 1, ..., G-1] on the lane axis.
    offs = start + step * lax.broadcasted_iota(
        jnp.int32, (1, n_gaussians), 1).astype(jnp.float32)          # (1, G)
    diff = d - offs                                                   # (TM, G)
    o_ref[...] = jnp.exp(coeff * diff * diff).astype(o_ref.dtype)


class GaussianSmearing:
    """JAX/Pallas port of the SchNet GaussianSmearing module."""

    def __init__(self, start, stop, n_gaussians):
        assert n_gaussians >= 2, "n_gaussians must be >= 2 (step would be undefined)"
        self.start = float(start)
        self.stop = float(stop)
        self.n_gaussians = int(n_gaussians)
        self.step = (self.stop - self.start) / (self.n_gaussians - 1)
        self.coeff = -0.5 / self.step ** 2
        # Kept only for reference / testing parity with the torch module.
        self.offset = jnp.linspace(start, stop, n_gaussians, dtype=jnp.float32)

    def __call__(self, interatomic_dists, tile_m=8192, out_dtype=jnp.float32):
        d = interatomic_dists.reshape(-1, 1).astype(jnp.float32)     # (E, 1)
        E = d.shape[0]
        G = self.n_gaussians

        # Large row tiles amortize the ~0.35 us per-grid-step overhead; clamp
        # for small inputs, keeping the sublane dim a multiple of 8.
        tm = max(8, min(int(tile_m), ((E + 7) // 8) * 8))
        grid = (pl.cdiv(E, tm),)

        kernel = functools.partial(
            _gaussian_smearing_kernel, self.coeff, self.start, self.step, G
        )

        out_itemsize = jnp.dtype(out_dtype).itemsize
        cost = pl.CostEstimate(
            flops=3 * E * G,                      # sub, mul, mul per element
            transcendentals=E * G,                # one exp per element
            bytes_accessed=4 * E + out_itemsize * E * G,
        )

        out = pl.pallas_call(
            kernel,
            out_shape=jax.ShapeDtypeStruct((E, G), out_dtype),
            grid_spec=pl.GridSpec(
                grid=grid,
                in_specs=[pl.BlockSpec((tm, 1), lambda i: (i, 0))],
                # Block last dim == full array dim -> exact (E, G) output,
                # no lane padding, no post-kernel slice.
                out_specs=pl.BlockSpec((tm, G), lambda i: (i, 0)),
            ),
            compiler_params=pltpu.CompilerParams(
                dimension_semantics=("parallel",),
                vmem_limit_bytes=32 * 1024 * 1024,
            ),
            cost_estimate=cost,
        )(d)
        return out


def _reference(dists, offset, coeff):
    diff = dists.reshape(-1, 1) - offset.reshape(1, -1)
    return jnp.exp(coeff * diff * diff)


if __name__ == "__main__":
    key = jax.random.PRNGKey(0)
    start, stop = 0.0, 5.0

    n_edges = 200                                  # deliberately not a tile multiple
    dists = jax.random.uniform(key, (n_edges,), dtype=jnp.float32,
                               minval=0.0, maxval=5.0)

    # Case 1: G a multiple of 128 (unmasked lane-dense stores), single grid step.
    smear = GaussianSmearing(start, stop, 128)
    out = jax.block_until_ready(smear(dists))
    ref = _reference(dists, smear.offset, smear.coeff)
    assert out.shape == (n_edges, 128)
    assert jnp.allclose(out, ref, atol=1e-5, rtol=1e-5)

    # Case 2: SchNet-style G=50 (block last dim == full array dim, masked vst),
    # small tile to exercise a multi-step grid with a ragged last row block.
    smear2 = GaussianSmearing(start, stop, 50)
    out2 = jax.block_until_ready(smear2(dists, tile_m=64))
    ref2 = _reference(dists, smear2.offset, smear2.coeff)
    assert out2.shape == (n_edges, 50)
    assert jnp.allclose(out2, ref2, atol=1e-5, rtol=1e-5)

    # Case 3: bf16 output path (narrowed store only; exp stays f32).
    out3 = jax.block_until_ready(smear2(dists, out_dtype=jnp.bfloat16))
    assert out3.shape == (n_edges, 50)
    assert jnp.allclose(out3.astype(jnp.float32), ref2, atol=1e-2, rtol=1e-2)

    print("KERNEL_OK")
</pallas_src>

<mosaic_0001>
module attributes {stable_mosaic.version = 11 : i64} {
  func.func @_gaussian_smearing_kernel(%arg0: i32, %arg1: memref<200x1xf32, #tpu.memory_space<vmem>>, %arg2: memref<200x128xf32, #tpu.memory_space<vmem>>) attributes {dimension_semantics = [#tpu.dimension_semantics<parallel>], iteration_bounds = array<i64: 1>, scalar_prefetch = 0 : i64, scratch_operands = 0 : i64, tpu.core_type = #tpu.core_type<tc>, window_params = [{transform_indices = @transform_0, window_bounds = array<i64: 200, 1>}, {transform_indices = @transform_1, window_bounds = array<i64: 200, 128>}]} {
    %c0 = arith.constant 0 : index
    %c0_0 = arith.constant 0 : index
    %0 = vector.load %arg1[%c0, %c0_0] : memref<200x1xf32, #tpu.memory_space<vmem>>, vector<200x1xf32>
    %1 = tpu.iota {dimensions = array<i32: 1>} : vector<1x128xi32>
    %2 = arith.sitofp %1 : vector<1x128xi32> to vector<1x128xf32>
    %cst = arith.constant 0.0393700786 : f32
    %3 = vector.broadcast %cst : f32 to vector<1x128xf32>
    %4 = arith.mulf %3, %2 : vector<1x128xf32>
    %cst_1 = arith.constant 0.000000e+00 : f32
    %5 = vector.broadcast %cst_1 : f32 to vector<1x128xf32>
    %6 = arith.addf %5, %4 : vector<1x128xf32>
    %7 = vector.broadcast %0 : vector<200x1xf32> to vector<200x128xf32>
    %8 = vector.broadcast %6 : vector<1x128xf32> to vector<200x128xf32>
    %9 = arith.subf %7, %8 : vector<200x128xf32>
    %cst_2 = arith.constant -3.225800e+02 : f32
    %10 = vector.broadcast %cst_2 : f32 to vector<200x128xf32>
    %11 = arith.mulf %10, %9 : vector<200x128xf32>
    %12 = arith.mulf %11, %9 : vector<200x128xf32>
    %13 = math.exp %12 : vector<200x128xf32>
    %c0_3 = arith.constant 0 : index
    %c0_4 = arith.constant 0 : index
    %14 = vector.load %arg2[%c0_3, %c0_4] : memref<200x128xf32, #tpu.memory_space<vmem>>, vector<200x128xf32>
    tpu.vector_store %arg2[%c0_3, %c0_4], %13 {strides = array<i32>} : memref<200x128xf32, #tpu.memory_space<vmem>>, vector<200x128xf32>,
    return
  }
  func.func @transform_0(%arg0: i32) -> (i32, i32) {
    %c0_i32 = arith.constant 0 : i32
    %c0_i32_0 = arith.constant 0 : i32
    return %arg0, %c0_i32 : i32, i32
  }
  func.func @transform_1(%arg0: i32) -> (i32, i32) {
    %c0_i32 = arith.constant 0 : i32
    %c0_i32_0 = arith.constant 0 : i32
    return %arg0, %c0_i32 : i32, i32
  }
}

</mosaic_0001>

<bundles_post_ra>
// kernel: tpu_custom_call.1
= control target key start
LH: loop header
LB: loop body
LE: loop exit
PB: predicated region body
PF: predicated region fallthrough
CT: control target
= control target key end

     0   :  { %v410_v2 = vmov 0   ;;  %s538_s0 = inlined_call_operand.vmem [shape: f32[200,1], index: 0, kind: input, shape index: {}]   ;;  %s539_s1 = inlined_call_operand.hbm [shape: f32[200,128], index: 1, kind: output, shape index: {}]  }
   0x1   :  { %v11_v0 = vld [vmem:[%s538_s0 + $0x10] sm:$0xff]  ;;  %v9_v1 = vld [vmem:[%s538_s0] sm:$0xff]  ;;  %335 = vset.pattern.permute.xlu1 %v410_v2  ;;  %334 = vset.pattern.permute.xlu0 %v410_v2  ;;  %v12_v3 = vld [vmem:[%s538_s0 + $0x18] sm:$0xff] }
   0x2   :  { %51 = vperm.xlu1 %335, %v11_v0   ;;  %41 = vperm.xlu0 %334, %v9_v1   ;;  %v10_v4 = vld [vmem:[%s538_s0 + $0x8] sm:$0xff]  ;;  %v13_v6 = vld [vmem:[%s538_s0 + $0x20] sm:$0xff] }
   0x3   :  { %v14_v5 = vld [vmem:[%s538_s0 + $0x28] sm:$0xff] }
   0x6   :  { %56 = vperm.xlu1 %335, %v12_v3   ;;  %46 = vperm.xlu0 %334, %v10_v4  }
   0x7   :  { %6 = vsyncpa [#allocation3], 0  ;;  %v16_v7 = vld [vmem:[%s538_s0 + $0x38] sm:$0xff]  ;;  %v15_v8 = vld [vmem:[%s538_s0 + $0x30] sm:$0xff]  ;;  %v34_v26 = vlaneseq }
   0x8   :  { %v18_v9 = vld [vmem:[%s538_s0 + $0x48] sm:$0xff]  ;;  %v17_v10 = vld [vmem:[%s538_s0 + $0x40] sm:$0xff]  ;;  %v20_v11 = vld [vmem:[%s538_s0 + $0x58] sm:$0xff] }
   0x9   :  { %v19_v12 = vld [vmem:[%s538_s0 + $0x50] sm:$0xff]  ;;  %v22_v13 = vld [vmem:[%s538_s0 + $0x68] sm:$0xff]  ;;  %v21_v14 = vld [vmem:[%s538_s0 + $0x60] sm:$0xff]  ;;  %v35_v27 = vand.u32 127, %v34_v26 }
   0xa   :  { %66 = vperm.xlu1 %335, %v14_v5   ;;  %61 = vperm.xlu0 %334, %v13_v6   ;;  %v24_v15 = vld [vmem:[%s538_s0 + $0x78] sm:$0xff]  ;;  %v23_v16 = vld [vmem:[%s538_s0 + $0x70] sm:$0xff]  ;;  %v26_v17 = vld [vmem:[%s538_s0 + $0x88] sm:$0xff] }
   0xb   :  { %v25_v18 = vld [vmem:[%s538_s0 + $0x80] sm:$0xff]  ;;  %v28_v19 = vld [vmem:[%s538_s0 + $0x98] sm:$0xff]  ;;  %v27_v20 = vld [vmem:[%s538_s0 + $0x90] sm:$0xff]  ;;  %v36_v28 = vcvt.s32.f32 %v35_v27 }
   0xc   :  { %v30_v21 = vld [vmem:[%s538_s0 + $0xa8] sm:$0xff]  ;;  %v29_v22 = vld [vmem:[%s538_s0 + $0xa0] sm:$0xff]  ;;  %v32_v23 = vld [vmem:[%s538_s0 + $0xb8] sm:$0xff] }
   0xd   :  { %v31_v24 = vld [vmem:[%s538_s0 + $0xb0] sm:$0xff]  ;;  %v33_v25 = vld [vmem:[%s538_s0 + $0xc0] sm:$0xff]  ;;  %v499_v29 = vmul.f32 0.03937008, %v36_v28  ;;  %s411_s0 = smov [#allocation2]  }
   0xe   :  { %76 = vperm.xlu1 %335, %v16_v7   ;;  %71 = vperm.xlu0 %334, %v15_v8   ;;  %s319_s27 = sshll.u32 %s411_s0, 4  ;;  %s320_s27 = int_to_ptr.vmem [resolvable:$true] %s319_s27 }
   0xf   :  { %s386_s28 = scalar_lea.vmem %s320_s27, 3200  ;;  %p391_p1 = scmp.lt.s32.totalorder %s320_s27, %s320_s27 }
  0x10   :  { %p387_p0 = scmp.ne.s32.totalorder %s320_s27, %s386_s28  ;;  %p392_p2 = scmp.lt.s32.totalorder %s386_s28, %s386_s28 }
  0x12   :  { %86 = vperm.xlu1 %335, %v18_v9   ;;  %81 = vperm.xlu0 %334, %v17_v10   ;;  %p393_p3 = por %p392_p2, %p391_p1 }
  0x14   :  { %p394_p4 = pnand %p393_p3, %p387_p0 }
  0x16   :  { %96 = vperm.xlu1 %335, %v20_v11   ;;  %91 = vperm.xlu0 %334, %v19_v12  }
  0x1a   :  { %106 = vperm.xlu1 %335, %v22_v13   ;;  %101 = vperm.xlu0 %334, %v21_v14  }
  0x1e   :  { %116 = vperm.xlu1 %335, %v24_v15   ;;  %111 = vperm.xlu0 %334, %v23_v16  }
  0x22   :  { %126 = vperm.xlu1 %335, %v26_v17   ;;  %121 = vperm.xlu0 %334, %v25_v18  }
  0x26   :  { %136 = vperm.xlu1 %335, %v28_v19   ;;  %131 = vperm.xlu0 %334, %v27_v20  }
  0x2a   :  { %146 = vperm.xlu1 %335, %v30_v21   ;;  %141 = vperm.xlu0 %334, %v29_v22  }
  0x2e   :  { %156 = vperm.xlu1 %335, %v32_v23   ;;  %151 = vperm.xlu0 %334, %v31_v24  }
  0x32   :  { %161 = vperm.xlu0 %334, %v33_v25  }
  0x81   :  { %v52_v30 = vpop.permute.xlu1 %51  ;;  %v42_v31 = vpop.permute.xlu0 %41 }
  0x82   :  { %v166_v32 = vsub.f32 %v52_v30, %v499_v29  ;;  %v164_v33 = vsub.f32 %v42_v31, %v499_v29 }
  0x84   :  { %v191_v34 = vmul.f32 -322.58, %v166_v32  ;;  %v189_v35 = vmul.f32 -322.58, %v164_v33 }
  0x85   :  { %v57_v36 = vpop.permute.xlu1 %56  ;;  %v47_v37 = vpop.permute.xlu0 %46 }
  0x86   :  { %v216_v38 = vmul.f32 %v191_v34, %v166_v32  ;;  %v214_v39 = vmul.f32 %v189_v35, %v164_v33  ;;  %v167_v40 = vsub.f32 %v57_v36, %v499_v29  ;;  %v165_v41 = vsub.f32 %v47_v37, %v499_v29 }
  0x88   :  { %v243_v42 = vmul.f32 1.442695, %v216_v38  ;;  %v239_v43 = vmul.f32 1.442695, %v214_v39  ;;  %v192_v44 = vmul.f32 -322.58, %v167_v40 }
  0x89   :  { %v190_v45 = vmul.f32 -322.58, %v165_v41  ;;  %v67_v46 = vpop.permute.xlu1 %66  ;;  %v62_v47 = vpop.permute.xlu0 %61 }
  0x8a   :  { %336 = vpow2.f32 %v243_v42  ;;  %v217_v48 = vmul.f32 %v192_v44, %v167_v40  ;;  %v169_v49 = vsub.f32 %v67_v46, %v499_v29  ;;  %v168_v50 = vsub.f32 %v62_v47, %v499_v29 }
  0x8b   :  { %338 = vpow2.f32 %v239_v43  ;;  %v215_v51 = vmul.f32 %v190_v45, %v165_v41 }
  0x8c   :  { %v245_v52 = vmul.f32 1.442695, %v217_v48  ;;  %v194_v53 = vmul.f32 -322.58, %v169_v49  ;;  %v193_v54 = vmul.f32 -322.58, %v168_v50 }
  0x8d   :  { %v241_v55 = vmul.f32 1.442695, %v215_v51  ;;  %v77_v56 = vpop.permute.xlu1 %76  ;;  %v72_v57 = vpop.permute.xlu0 %71 }
  0x8e   :  { %340 = vpow2.f32 %v245_v52  ;;  %v219_v58 = vmul.f32 %v194_v53, %v169_v49  ;;  %v218_v59 = vmul.f32 %v193_v54, %v168_v50  ;;  %v171_v60 = vsub.f32 %v77_v56, %v499_v29 }
  0x8f   :  { %342 = vpow2.f32 %v241_v55  ;;  %v170_v61 = vsub.f32 %v72_v57, %v499_v29 }
  0x90   :  { %v249_v62 = vmul.f32 1.442695, %v219_v58  ;;  %v247_v63 = vmul.f32 1.442695, %v218_v59  ;;  %v196_v0 = vmul.f32 -322.58, %v171_v60 }
  0x91   :  { %v195_v1 = vmul.f32 -322.58, %v170_v61  ;;  %v87_v2 = vpop.permute.xlu1 %86  ;;  %v82_v3 = vpop.permute.xlu0 %81 }
  0x92   :  { %344 = vpow2.f32 %v249_v62  ;;  %v221_v4 = vmul.f32 %v196_v0, %v171_v60  ;;  %v173_v5 = vsub.f32 %v87_v2, %v499_v29  ;;  %v172_v6 = vsub.f32 %v82_v3, %v499_v29 }
  0x93   :  { %346 = vpow2.f32 %v247_v63  ;;  %v220_v7 = vmul.f32 %v195_v1, %v170_v61 }
  0x94   :  { %v337_v8 = vpop.eup %336  ;;  %v253_v9 = vmul.f32 1.442695, %v221_v4  ;;  %v198_v10 = vmul.f32 -322.58, %v173_v5  ;;  %v197_v11 = vmul.f32 -322.58, %v172_v6 }
  0x95   :  { %v339_v12 = vpop.eup %338  ;;  %291 = vst [vmem:[#allocation2 + $0x10] sm:$0xff] %v337_v8  ;;  %v251_v13 = vmul.f32 1.442695, %v220_v7  ;;  %v97_v14 = vpop.permute.xlu1 %96 }
  0x96   :  { %v92_v15 = vpop.permute.xlu0 %91  ;;  %289 = vst [vmem:[#allocation2] sm:$0xff] %v339_v12  ;;  %348 = vpow2.f32 %v253_v9  ;;  %v223_v16 = vmul.f32 %v198_v10, %v173_v5  ;;  %v222_v17 = vmul.f32 %v197_v11, %v172_v6  ;;  %v175_v18 = vsub.f32 %v97_v14, %v499_v29 }
  0x97   :  { %350 = vpow2.f32 %v251_v13  ;;  %v174_v19 = vsub.f32 %v92_v15, %v499_v29 }
  0x98   :  { %v341_v20 = vpop.eup %340  ;;  %v257_v21 = vmul.f32 1.442695, %v223_v16  ;;  %v255_v22 = vmul.f32 1.442695, %v222_v17  ;;  %v200_v23 = vmul.f32 -322.58, %v175_v18 }
  0x99   :  { %v343_v24 = vpop.eup %342  ;;  %292 = vst [vmem:[#allocation2 + $0x18] sm:$0xff] %v341_v20  ;;  %v199_v25 = vmul.f32 -322.58, %v174_v19  ;;  %v107_v26 = vpop.permute.xlu1 %106 }
  0x9a   :  { %v102_v27 = vpop.permute.xlu0 %101  ;;  %290 = vst [vmem:[#allocation2 + $0x8] sm:$0xff] %v343_v24  ;;  %352 = vpow2.f32 %v257_v21  ;;  %v225_v28 = vmul.f32 %v200_v23, %v175_v18  ;;  %v177_v30 = vsub.f32 %v107_v26, %v499_v29 }
  0x9b   :  { %v176_v31 = vsub.f32 %v102_v27, %v499_v29  ;;  %354 = vpow2.f32 %v255_v22  ;;  %v224_v32 = vmul.f32 %v199_v25, %v174_v19 }
  0x9c   :  { %v345_v33 = vpop.eup %344  ;;  %v261_v34 = vmul.f32 1.442695, %v225_v28  ;;  %v202_v35 = vmul.f32 -322.58, %v177_v30 }
  0x9d   :  { %v201_v36 = vmul.f32 -322.58, %v176_v31  ;;  %v347_v37 = vpop.eup %346  ;;  %294 = vst [vmem:[#allocation2 + $0x28] sm:$0xff] %v345_v33  ;;  %v259_v38 = vmul.f32 1.442695, %v224_v32  ;;  %v117_v39 = vpop.permute.xlu1 %116 }
  0x9e   :  { %v112_v40 = vpop.permute.xlu0 %111  ;;  %293 = vst [vmem:[#allocation2 + $0x20] sm:$0xff] %v347_v37  ;;  %356 = vpow2.f32 %v261_v34  ;;  %v227_v41 = vmul.f32 %v202_v35, %v177_v30  ;;  %v179_v43 = vsub.f32 %v117_v39, %v499_v29 }
  0x9f   :  { %v226_v42 = vmul.f32 %v201_v36, %v176_v31  ;;  %358 = vpow2.f32 %v259_v38  ;;  %v178_v44 = vsub.f32 %v112_v40, %v499_v29 }
  0xa0   :  { %v349_v45 = vpop.eup %348  ;;  %v265_v46 = vmul.f32 1.442695, %v227_v41  ;;  %v204_v48 = vmul.f32 -322.58, %v179_v43 }
  0xa1   :  { %v263_v47 = vmul.f32 1.442695, %v226_v42  ;;  %v351_v49 = vpop.eup %350  ;;  %296 = vst [vmem:[#allocation2 + $0x38] sm:$0xff] %v349_v45  ;;  %v203_v50 = vmul.f32 -322.58, %v178_v44  ;;  %v127_v51 = vpop.permute.xlu1 %126 }
  0xa2   :  { %v122_v52 = vpop.permute.xlu0 %121  ;;  %295 = vst [vmem:[#allocation2 + $0x30] sm:$0xff] %v351_v49  ;;  %360 = vpow2.f32 %v265_v46  ;;  %v229_v53 = vmul.f32 %v204_v48, %v179_v43  ;;  %v181_v54 = vsub.f32 %v127_v51, %v499_v29 }
  0xa3   :  { %v180_v55 = vsub.f32 %v122_v52, %v499_v29  ;;  %362 = vpow2.f32 %v263_v47  ;;  %v228_v56 = vmul.f32 %v203_v50, %v178_v44 }
  0xa4   :  { %v353_v57 = vpop.eup %352  ;;  %v269_v58 = vmul.f32 1.442695, %v229_v53  ;;  %v206_v59 = vmul.f32 -322.58, %v181_v54 }
  0xa5   :  { %v205_v60 = vmul.f32 -322.58, %v180_v55  ;;  %v355_v61 = vpop.eup %354  ;;  %298 = vst [vmem:[#allocation2 + $0x48] sm:$0xff] %v353_v57  ;;  %v267_v62 = vmul.f32 1.442695, %v228_v56  ;;  %v137_v63 = vpop.permute.xlu1 %136 }
  0xa6   :  { %v132_v0 = vpop.permute.xlu0 %131  ;;  %297 = vst [vmem:[#allocation2 + $0x40] sm:$0xff] %v355_v61  ;;  %364 = vpow2.f32 %v269_v58  ;;  %v231_v1 = vmul.f32 %v206_v59, %v181_v54  ;;  %v183_v3 = vsub.f32 %v137_v63, %v499_v29 }
  0xa7   :  { %v230_v2 = vmul.f32 %v205_v60, %v180_v55  ;;  %366 = vpow2.f32 %v267_v62  ;;  %v182_v4 = vsub.f32 %v132_v0, %v499_v29 }
  0xa8   :  { %v357_v5 = vpop.eup %356  ;;  %v273_v6 = vmul.f32 1.442695, %v231_v1  ;;  %v208_v8 = vmul.f32 -322.58, %v183_v3 }
  0xa9   :  { %v271_v7 = vmul.f32 1.442695, %v230_v2  ;;  %v359_v9 = vpop.eup %358  ;;  %300 = vst [vmem:[#allocation2 + $0x58] sm:$0xff] %v357_v5  ;;  %v207_v10 = vmul.f32 -322.58, %v182_v4  ;;  %v147_v11 = vpop.permute.xlu1 %146 }
  0xaa   :  { %v142_v12 = vpop.permute.xlu0 %141  ;;  %299 = vst [vmem:[#allocation2 + $0x50] sm:$0xff] %v359_v9  ;;  %368 = vpow2.f32 %v273_v6  ;;  %v233_v13 = vmul.f32 %v208_v8, %v183_v3  ;;  %v185_v14 = vsub.f32 %v147_v11, %v499_v29 }
  0xab   :  { %v184_v15 = vsub.f32 %v142_v12, %v499_v29  ;;  %370 = vpow2.f32 %v271_v7  ;;  %v232_v16 = vmul.f32 %v207_v10, %v182_v4 }
  0xac   :  { %v361_v17 = vpop.eup %360  ;;  %v277_v18 = vmul.f32 1.442695, %v233_v13  ;;  %v210_v19 = vmul.f32 -322.58, %v185_v14 }
  0xad   :  { %v209_v20 = vmul.f32 -322.58, %v184_v15  ;;  %v363_v21 = vpop.eup %362  ;;  %302 = vst [vmem:[#allocation2 + $0x68] sm:$0xff] %v361_v17  ;;  %v275_v22 = vmul.f32 1.442695, %v232_v16  ;;  %v157_v23 = vpop.permute.xlu1 %156 }
  0xae   :  { %v152_v24 = vpop.permute.xlu0 %151  ;;  %301 = vst [vmem:[#allocation2 + $0x60] sm:$0xff] %v363_v21  ;;  %372 = vpow2.f32 %v277_v18  ;;  %v235_v25 = vmul.f32 %v210_v19, %v185_v14  ;;  %v187_v27 = vsub.f32 %v157_v23, %v499_v29 }
  0xaf   :  { %v234_v26 = vmul.f32 %v209_v20, %v184_v15  ;;  %374 = vpow2.f32 %v275_v22  ;;  %v186_v28 = vsub.f32 %v152_v24, %v499_v29 }
  0xb0   :  { %v365_v30 = vpop.eup %364  ;;  %v281_v31 = vmul.f32 1.442695, %v235_v25  ;;  %v212_v33 = vmul.f32 -322.58, %v187_v27 }
  0xb1   :  { %v279_v32 = vmul.f32 1.442695, %v234_v26  ;;  %v367_v34 = vpop.eup %366  ;;  %304 = vst [vmem:[#allocation2 + $0x78] sm:$0xff] %v365_v30  ;;  %v211_v35 = vmul.f32 -322.58, %v186_v28 }
  0xb2   :  { %v162_v36 = vpop.permute.xlu0 %161  ;;  %303 = vst [vmem:[#allocation2 + $0x70] sm:$0xff] %v367_v34  ;;  %376 = vpow2.f32 %v281_v31  ;;  %v237_v37 = vmul.f32 %v212_v33, %v187_v27 }
  0xb3   :  { %v188_v38 = vsub.f32 %v162_v36, %v499_v29  ;;  %378 = vpow2.f32 %v279_v32  ;;  %v236_v39 = vmul.f32 %v211_v35, %v186_v28 }
  0xb4   :  { %v369_v40 = vpop.eup %368  ;;  %v285_v41 = vmul.f32 1.442695, %v237_v37 }
  0xb5   :  { %v213_v42 = vmul.f32 -322.58, %v188_v38  ;;  %v371_v43 = vpop.eup %370  ;;  %306 = vst [vmem:[#allocation2 + $0x88] sm:$0xff] %v369_v40  ;;  %v283_v44 = vmul.f32 1.442695, %v236_v39 }
  0xb6   :  { %305 = vst [vmem:[#allocation2 + $0x80] sm:$0xff] %v371_v43  ;;  %380 = vpow2.f32 %v285_v41 }
  0xb7   :  { %v238_v45 = vmul.f32 %v213_v42, %v188_v38  ;;  %382 = vpow2.f32 %v283_v44 }
  0xb8   :  { %v373_v46 = vpop.eup %372 }
  0xb9   :  { %v287_v47 = vmul.f32 1.442695, %v238_v45  ;;  %v375_v48 = vpop.eup %374  ;;  %308 = vst [vmem:[#allocation2 + $0x98] sm:$0xff] %v373_v46 }
  0xba   :  { %307 = vst [vmem:[#allocation2 + $0x90] sm:$0xff] %v375_v48 }
  0xbb   :  { %384 = vpow2.f32 %v287_v47 }
  0xbc   :  { %v377_v49 = vpop.eup %376 }
  0xbd   :  { %v379_v29 = vpop.eup %378  ;;  %310 = vst [vmem:[#allocation2 + $0xa8] sm:$0xff] %v377_v49 }
  0xbe   :  { %309 = vst [vmem:[#allocation2 + $0xa0] sm:$0xff] %v379_v29 }
  0xc0   :  { %v381_v50 = vpop.eup %380 }
  0xc1   :  { %v383_v51 = vpop.eup %382  ;;  %312 = vst [vmem:[#allocation2 + $0xb8] sm:$0xff] %v381_v50 }
  0xc2   :  { %311 = vst [vmem:[#allocation2 + $0xb0] sm:$0xff] %v383_v51 }
  0xc5   :  { %v385_v52 = vpop.eup %384 }
  0xc6   :  { %313 = vst [vmem:[#allocation2 + $0xc0] sm:$0xff] %v385_v52 }
  0xc7   :  { %397 = shalt.err (!%p394_p4)
}
  0xc8   :  { %s398_s2 = scalar_lea.hbm %s539_s1, 3200 }
  0xc9   :  { %p399_p5 = scmp.ne.s32.totalorder %s539_s1, %s398_s2  ;;  %p402_p6 = scmp.lt.u32.totalorder %s398_s2, %s539_s1 }
  0xcb   :  { %p404_p7 = pnand %p402_p6, %p399_p5 }
  0xcd   :  { %407 = shalt.err (!%p404_p7)
}
  0xce   :  { %s412_s7 = smov 128   ;;  %s413_s8 = smov 8  }
  0xcf   :  { %325 = dma.vmem_to_hbm [thread:$0]  %s320_s27, 3200, %s539_s1, [#allocation3], %s412_s7, %s412_s7, %s413_s8  }
  0xd0   :  { %408 = dma.done.wait [#allocation3], 3200  }
  0xd1   :  { %409 = vsyncadd [#allocation3], 4294964096 }
  0xd2   :  { %329 = vsyncpa [#allocation3], 1 }

</bundles_post_ra>
